<compile_context>
chip_gen: v6e
topology: v6e:2x2x1
jax: 0.10.0
libtpu: 0.0.40
codegen_flags: <defaults>
</compile_context>

<pallas_src>
import functools

import jax
import jax.numpy as jnp
import numpy as np
from jax.experimental import pallas as pl
from jax.experimental.pallas import tpu as pltpu


def _mixprop_kernel(a_ref, x_ref, w_ref, b_ref, o_ref, *, gdep, alpha):
    """One batch element of mix-hop propagation + fused 1x1 conv.

    a_ref: (V, V)            row-normalized (adj + I), precomputed in wrapper
    x_ref: (V, L, C)         activations in NVLC layout for this batch element
    w_ref: (gdep+1, c_out, C) 1x1-conv weight split per hop
    b_ref: (c_out, 1)        bias
    o_ref: (c_out, V*L)      lane-dense output block (reshaped to NCHW outside)
    """
    V, L, C = x_ref.shape
    a = a_ref[...]
    x = x_ref[...]

    def hop_contrib(k, h):
        # (c_out, C) @ (V*L, C)^T -> (c_out, V*L); f32 accumulation on the MXU.
        return jax.lax.dot_general(
            w_ref[k], h.reshape(V * L, C),
            dimension_numbers=(((1,), (1,)), ((), ())),
            preferred_element_type=jnp.float32)

    h = x
    y = hop_contrib(0, h)
    for k in range(1, gdep + 1):
        # nconv: h_new[v, l, c] = sum_w a[v, w] * h[w, l, c]  (== 'ncwl,vw->ncvl')
        hn = jax.lax.dot_general(
            a, h,
            dimension_numbers=(((1,), (0,)), ((), ())),
            preferred_element_type=jnp.float32)
        h = alpha * x + (1.0 - alpha) * hn
        y = y + hop_contrib(k, h)

    o_ref[...] = (y + b_ref[...]).astype(o_ref.dtype)


def mixprop_forward(x_nchw, adj, weight, bias, *, gdep, alpha):
    """x_nchw: (N, C, V, L) like PyTorch; adj: (V, V);
    weight: (c_out, (gdep+1)*C) (1x1 conv kernel squeezed); bias: (c_out,).
    Returns (N, c_out, V, L) to match the PyTorch module."""
    N, C, V, L = x_nchw.shape
    c_out = weight.shape[0]
    KC = (gdep + 1) * C
    assert weight.shape == (c_out, KC)

    # Hoisted out of the kernel: adj + I, row-degree normalize -- done once.
    a = adj.astype(jnp.float32) + jnp.eye(V, dtype=jnp.float32)
    a = a / jnp.sum(a, axis=1, keepdims=True)

    # NCHW -> NVLC: node contraction and channel contraction both become clean matmuls.
    x = jnp.transpose(x_nchw, (0, 2, 3, 1))                          # (N, V, L, C)
    # Split the 1x1 conv weight per hop: (c_out, (gdep+1)*C) -> (gdep+1, c_out, C).
    w = jnp.transpose(weight.reshape(c_out, gdep + 1, C), (1, 0, 2))
    b = bias.reshape(c_out, 1)

    kernel = functools.partial(_mixprop_kernel, gdep=gdep, alpha=alpha)
    out = pl.pallas_call(
        kernel,
        out_shape=jax.ShapeDtypeStruct((N, c_out, V * L), x_nchw.dtype),
        grid_spec=pltpu.PrefetchScalarGridSpec(
            num_scalar_prefetch=0,
            grid=(N,),  # one batch element per step; for large V*L*C this already saturates
            in_specs=[
                pl.BlockSpec((V, V), lambda n: (0, 0)),
                pl.BlockSpec((None, V, L, C), lambda n: (n, 0, 0, 0)),
                pl.BlockSpec((gdep + 1, c_out, C), lambda n: (0, 0, 0)),
                pl.BlockSpec((c_out, 1), lambda n: (0, 0)),
            ],
            out_specs=pl.BlockSpec((None, c_out, V * L), lambda n: (n, 0, 0)),
        ),
        compiler_params=pltpu.CompilerParams(
            dimension_semantics=("parallel",)),
    )(a, x, w, b)
    # (N, c_out, V*L) -> (N, c_out, V, L): pure reshape, no transpose, no extra HBM pass.
    return out.reshape(N, c_out, V, L)


def mixprop_ref(x, adj, weight, bias, *, gdep, alpha):
    """Pure-JAX reference mirroring the PyTorch forward (NCHW)."""
    V = adj.shape[0]
    adj = adj + jnp.eye(V, dtype=adj.dtype)
    d = adj.sum(1)
    a = adj / d[:, None]
    h = x
    outs = [h]
    for _ in range(gdep):
        h = alpha * x + (1 - alpha) * jnp.einsum('ncwl,vw->ncvl', h, a)
        outs.append(h)
    ho = jnp.concatenate(outs, axis=1)                         # (N, (gdep+1)*C, V, L)
    y = jnp.einsum('nkvl,ok->novl', ho, weight)
    return y + bias[None, :, None, None]


if __name__ == "__main__":
    # mixprop(c_in=4, c_out=8, gdep=2, dropout=0.3, alpha=0.05)
    N, C, V, L = 2, 4, 8, 16
    gdep, alpha, c_out = 2, 0.05, 8
    KC = (gdep + 1) * C
    # TODO(synk): self.dropout is stored but never applied in the PyTorch forward; omitted.

    key = jax.random.PRNGKey(0)
    kx, ka, kw, kb = jax.random.split(key, 4)
    x = jax.random.normal(kx, (N, C, V, L), dtype=jnp.float32)
    adj = jax.random.uniform(ka, (V, V), dtype=jnp.float32)
    # deterministic Conv2d(KC, c_out, kernel_size=(1,1)) params (kernel dims squeezed)
    weight = jax.random.normal(kw, (c_out, KC), dtype=jnp.float32) / np.sqrt(KC)
    bias = jax.random.normal(kb, (c_out,), dtype=jnp.float32) * 0.1

    out = mixprop_forward(x, adj, weight, bias, gdep=gdep, alpha=alpha)
    out = jax.block_until_ready(out)

    ref = mixprop_ref(x, adj, weight, bias, gdep=gdep, alpha=alpha)
    np.testing.assert_allclose(np.asarray(out), np.asarray(ref), rtol=1e-2, atol=1e-2)
    assert out.shape == (N, c_out, V, L)
    print("KERNEL_OK")
</pallas_src>

<mosaic_0001>
module attributes {stable_mosaic.version = 11 : i64} {
  func.func @_mixprop_kernel(%arg0: i32, %arg1: memref<8x8xf32, #tpu.memory_space<vmem>>, %arg2: memref<1x8x16x4xf32, #tpu.memory_space<vmem>>, %arg3: memref<3x8x4xf32, #tpu.memory_space<vmem>>, %arg4: memref<8x1xf32, #tpu.memory_space<vmem>>, %arg5: memref<1x8x128xf32, #tpu.memory_space<vmem>>) attributes {dimension_semantics = [#tpu.dimension_semantics<parallel>], iteration_bounds = array<i64: 2>, scalar_prefetch = 0 : i64, scratch_operands = 0 : i64, tpu.core_type = #tpu.core_type<tc>, window_params = [{pipeline_mode = #tpu.pipeline_mode<synchronous>, transform_indices = @transform_0, window_bounds = array<i64: 8, 8>}, {transform_indices = @transform_1, window_bounds = array<i64: 1, 8, 16, 4>}, {pipeline_mode = #tpu.pipeline_mode<synchronous>, transform_indices = @transform_2, window_bounds = array<i64: 3, 8, 4>}, {pipeline_mode = #tpu.pipeline_mode<synchronous>, transform_indices = @transform_3, window_bounds = array<i64: 8, 1>}, {transform_indices = @transform_4, window_bounds = array<i64: 1, 8, 128>}]} {
    %c0 = arith.constant 0 : index
    %c0_0 = arith.constant 0 : index
    %0 = vector.load %arg1[%c0, %c0_0] : memref<8x8xf32, #tpu.memory_space<vmem>>, vector<8x8xf32>
    %c0_1 = arith.constant 0 : index
    %c0_2 = arith.constant 0 : index
    %c0_3 = arith.constant 0 : index
    %c0_4 = arith.constant 0 : index
    %1 = vector.load %arg2[%c0_1, %c0_2, %c0_3, %c0_4] : memref<1x8x16x4xf32, #tpu.memory_space<vmem>>, vector<1x8x16x4xf32>
    %2 = vector.shape_cast %1 : vector<1x8x16x4xf32> to vector<8x16x4xf32>
    %c0_5 = arith.constant 0 : index
    %c0_6 = arith.constant 0 : index
    %c0_7 = arith.constant 0 : index
    %3 = vector.load %arg3[%c0_5, %c0_6, %c0_7] : memref<3x8x4xf32, #tpu.memory_space<vmem>>, vector<1x8x4xf32>
    %4 = vector.shape_cast %3 : vector<1x8x4xf32> to vector<8x4xf32>
    %5 = vector.shape_cast %2 : vector<8x16x4xf32> to vector<128x4xf32>
    %cst = arith.constant dense<0.000000e+00> : vector<8x128xf32>
    %6 = tpu.matmul %4, %5, %cst {dimension_numbers = #tpu.dot_dimension_numbers<[1], [1], [0], [0], [0, 0, 1, 0], [], []>} : vector<8x4xf32>, vector<128x4xf32>, vector<8x128xf32> -> vector<8x128xf32>
    %cst_8 = arith.constant dense<0.000000e+00> : vector<8x16x4xf32>
    %7 = tpu.matmul %0, %2, %cst_8 {dimension_numbers = #tpu.dot_dimension_numbers<[1], [0], [0], [1, 2], [0, 0, 1, 1, 1, 2], [], []>} : vector<8x8xf32>, vector<8x16x4xf32>, vector<8x16x4xf32> -> vector<8x16x4xf32>
    %cst_9 = arith.constant 5.000000e-02 : f32
    %8 = vector.broadcast %cst_9 : f32 to vector<8x16x4xf32>
    %9 = arith.mulf %8, %2 : vector<8x16x4xf32>
    %cst_10 = arith.constant 0.949999988 : f32
    %10 = vector.broadcast %cst_10 : f32 to vector<8x16x4xf32>
    %11 = arith.mulf %10, %7 : vector<8x16x4xf32>
    %12 = arith.addf %9, %11 : vector<8x16x4xf32>
    %c1 = arith.constant 1 : index
    %c0_11 = arith.constant 0 : index
    %c0_12 = arith.constant 0 : index
    %13 = vector.load %arg3[%c1, %c0_11, %c0_12] : memref<3x8x4xf32, #tpu.memory_space<vmem>>, vector<1x8x4xf32>
    %14 = vector.shape_cast %13 : vector<1x8x4xf32> to vector<8x4xf32>
    %15 = vector.shape_cast %12 : vector<8x16x4xf32> to vector<128x4xf32>
    %cst_13 = arith.constant dense<0.000000e+00> : vector<8x128xf32>
    %16 = tpu.matmul %14, %15, %cst_13 {dimension_numbers = #tpu.dot_dimension_numbers<[1], [1], [0], [0], [0, 0, 1, 0], [], []>} : vector<8x4xf32>, vector<128x4xf32>, vector<8x128xf32> -> vector<8x128xf32>
    %17 = arith.addf %6, %16 : vector<8x128xf32>
    %cst_14 = arith.constant dense<0.000000e+00> : vector<8x16x4xf32>
    %18 = tpu.matmul %0, %12, %cst_14 {dimension_numbers = #tpu.dot_dimension_numbers<[1], [0], [0], [1, 2], [0, 0, 1, 1, 1, 2], [], []>} : vector<8x8xf32>, vector<8x16x4xf32>, vector<8x16x4xf32> -> vector<8x16x4xf32>
    %cst_15 = arith.constant 5.000000e-02 : f32
    %19 = vector.broadcast %cst_15 : f32 to vector<8x16x4xf32>
    %20 = arith.mulf %19, %2 : vector<8x16x4xf32>
    %cst_16 = arith.constant 0.949999988 : f32
    %21 = vector.broadcast %cst_16 : f32 to vector<8x16x4xf32>
    %22 = arith.mulf %21, %18 : vector<8x16x4xf32>
    %23 = arith.addf %20, %22 : vector<8x16x4xf32>
    %c2 = arith.constant 2 : index
    %c0_17 = arith.constant 0 : index
    %c0_18 = arith.constant 0 : index
    %24 = vector.load %arg3[%c2, %c0_17, %c0_18] : memref<3x8x4xf32, #tpu.memory_space<vmem>>, vector<1x8x4xf32>
    %25 = vector.shape_cast %24 : vector<1x8x4xf32> to vector<8x4xf32>
    %26 = vector.shape_cast %23 : vector<8x16x4xf32> to vector<128x4xf32>
    %cst_19 = arith.constant dense<0.000000e+00> : vector<8x128xf32>
    %27 = tpu.matmul %25, %26, %cst_19 {dimension_numbers = #tpu.dot_dimension_numbers<[1], [1], [0], [0], [0, 0, 1, 0], [], []>} : vector<8x4xf32>, vector<128x4xf32>, vector<8x128xf32> -> vector<8x128xf32>
    %28 = arith.addf %17, %27 : vector<8x128xf32>
    %c0_20 = arith.constant 0 : index
    %c0_21 = arith.constant 0 : index
    %29 = vector.load %arg4[%c0_20, %c0_21] : memref<8x1xf32, #tpu.memory_space<vmem>>, vector<8x1xf32>
    %30 = vector.broadcast %29 : vector<8x1xf32> to vector<8x128xf32>
    %31 = arith.addf %28, %30 : vector<8x128xf32>
    %c0_22 = arith.constant 0 : index
    %c0_23 = arith.constant 0 : index
    %c0_24 = arith.constant 0 : index
    %32 = vector.load %arg5[%c0_22, %c0_23, %c0_24] : memref<1x8x128xf32, #tpu.memory_space<vmem>>, vector<1x8x128xf32>
    %33 = vector.shape_cast %32 : vector<1x8x128xf32> to vector<8x128xf32>
    %34 = vector.shape_cast %31 : vector<8x128xf32> to vector<1x8x128xf32>
    tpu.vector_store %arg5[%c0_22, %c0_23, %c0_24], %34 {strides = array<i32>} : memref<1x8x128xf32, #tpu.memory_space<vmem>>, vector<1x8x128xf32>,
    return
  }
  func.func @transform_0(%arg0: i32) -> (i32, i32) {
    %c0_i32 = arith.constant 0 : i32
    %c0_i32_0 = arith.constant 0 : i32
    %c0_i32_1 = arith.constant 0 : i32
    return %c0_i32, %c0_i32_0 : i32, i32
  }
  func.func @transform_1(%arg0: i32) -> (i32, i32, i32, i32) {
    %c0_i32 = arith.constant 0 : i32
    %c0_i32_0 = arith.constant 0 : i32
    %c0_i32_1 = arith.constant 0 : i32
    %c0_i32_2 = arith.constant 0 : i32
    return %arg0, %c0_i32, %c0_i32_0, %c0_i32_1 : i32, i32, i32, i32
  }
  func.func @transform_2(%arg0: i32) -> (i32, i32, i32) {
    %c0_i32 = arith.constant 0 : i32
    %c0_i32_0 = arith.constant 0 : i32
    %c0_i32_1 = arith.constant 0 : i32
    %c0_i32_2 = arith.constant 0 : i32
    return %c0_i32, %c0_i32_0, %c0_i32_1 : i32, i32, i32
  }
  func.func @transform_3(%arg0: i32) -> (i32, i32) {
    %c0_i32 = arith.constant 0 : i32
    %c0_i32_0 = arith.constant 0 : i32
    %c0_i32_1 = arith.constant 0 : i32
    return %c0_i32, %c0_i32_0 : i32, i32
  }
  func.func @transform_4(%arg0: i32) -> (i32, i32, i32) {
    %c0_i32 = arith.constant 0 : i32
    %c0_i32_0 = arith.constant 0 : i32
    %c0_i32_1 = arith.constant 0 : i32
    return %arg0, %c0_i32, %c0_i32_0 : i32, i32, i32
  }
}

</mosaic_0001>

<bundles_post_ra>
// kernel: tpu_custom_call.1
= control target key start
LH: loop header
LB: loop body
LE: loop exit
PB: predicated region body
PF: predicated region fallthrough
CT: control target
= control target key end

     0   :  { %9 = vsyncpa [#allocation3], 0  ;;  %s3635_s0 = inlined_call_operand.vmem [shape: f32[8,8], index: 0, kind: input, shape index: {}]   ;;  %s3636_s1 = inlined_call_operand.vmem [shape: f32[2,8,16,4], index: 1, kind: input, shape index: {}]   ;;  %s3637_s2 = inlined_call_operand.vmem [shape: f32[3,8,4], index: 2, kind: input, shape index: {}]   ;;  %s3638_s3 = inlined_call_operand.vmem [shape: f32[8,1], index: 3, kind: input, shape index: {}]   ;;  %s3639_s4 = inlined_call_operand.hbm [shape: f32[2,8,128], index: 4, kind: output, shape index: {}]  }
   0x1   :  { %11 = vsyncpa [#allocation3 + $0x1], 0  ;;  %s2791_s15 = smov 0   ;;  %s2793_s16 = smov 0  }
   0x2   :  { %s2795_s17 = smov 0   ;;  %s2797_s18 = smov 0  }
   0x3 LB: > { %s2812_s19 = sadd.s32 4294967295, %s2728_s18   ;;  %s2355_s20 = sadd.s32 4294967294, %s2728_s18   ;;  %s2728_s18 = sphi %s2797_s18, %s3671_s18   ;;  %s2724_s17 = sphi %s2795_s17, %s3670_s17   ;;  %s2720_s16 = sphi %s2793_s16, %s3669_s16   ;;  %s2716_s15 = sphi %s2791_s15, %s3668_s15  }
   0x4   : > { %s2816_s21 = sadd.s32 1, %s2728_s18   ;;  %s113_s22 = sadd.s32 1, %s2724_s17 }
   0x5   : > { %s110_s23 = ssub.s32 %s2728_s18, %s2816_s21  ;;  %p123_p0 = scmp.ne.s32.totalorder %s2724_s17, %s2720_s16 }
   0x6   : > { %p111_p1 = scmp.eq.s32.totalorder %s110_s23, 0  ;;  %p124_p2 = scmp.eq.s32.totalorder %s2812_s19, 1 }
   0x7   : > { %p129_p3 = scmp.ne.s32.totalorder %s2720_s16, %s2716_s15  ;;  %p130_p4 = scmp.eq.s32.totalorder %s2355_s20, 1 }
   0x8   : > { %s2827_s24 = scalar_select %p111_p1, %s2724_s17, %s113_s22  }
   0x9   : > { %p2829_p5 = por %p124_p2, %p123_p0  ;;  %p2833_p6 = por %p130_p4, %p129_p3 }
   0xa   : > { %p2358_p7 = scmp.ge.s32.totalorder %s2728_s18, 1  ;;  %p165_p8 = scmp.lt.s32.totalorder %s2728_s18, 3 }
   0xc   : > { %p166_p9 = pnand %p2358_p7, %p165_p8 }
   0xd   : > { %p191_p10 = scmp.lt.s32.totalorder (!%p166_p9), %s2812_s19, 1  ;;  %s2732_s6 = smov (!%p166_p9), 4  }
   0xe   : > { %169 = sbr.rel (%p166_p9) target bundleno = 1305 (0x519), region = 36  ;;  %s2733_s7 = smov (!%p166_p9), 12  }
   0xf   : > { %s2734_s8 = smov (!%p166_p9), 8   ;;  %s2735_s9 = smov (!%p166_p9), 16  }
  0x10   : > { %s2736_s10 = smov (!%p166_p9), 20   ;;  %s2737_s11 = smov (!%p166_p9), 24  }
  0x11   : > { %s2738_s12 = smov (!%p166_p9), 28   ;;  %s2739_s13 = smov (!%p166_p9), 32  }
  0x12   : > { %s2741_s14 = smov (!%p166_p9), 36   ;;  %s2742_s20 = smov (!%p166_p9), 40  }
  0x13   : > { %v219_v0 = vlaneseq  ;;  %v2730_v1 = vmov 1983009808   ;;  %v2731_v3 = vmov 1934713408   ;;  %s192_s27 = scalar_select %p191_p10, %s2812_s19, 1  ;;  %vm546_vm0 = vcmask 31744  }
  0x14   : > { %v217_v2 = vunpack.c.l.s4 %v2730_v1  ;;  %v281_v4 = vunpack.c.l.s4 %v2731_v3  ;;  %vm2743_vm1 = vmmov 0   ;;  %s2744_s22 = smov 44   ;;  %s3642_s23 = smov 48   ;;  %vm548_vm2 = vcmask 64512  }
  0x15   : > { %v220_v5 = vshrl.u32 %v219_v0, 7  ;;  %s2421_s28 = sshll.u32 %s192_s27, 7  ;;  %s3643_s27 = smov 52   ;;  %vm550_vm3 = vcmask 97280   ;;  %vm552_vm4 = vcmask 130048   ;;  %vm554_vm5 = vcmask 162816  }
  0x16   : > { %v218_v6 = vunpack.c.0.s8 %v217_v2  ;;  %v282_v7 = vunpack.c.0.s8 %v281_v4  ;;  %s2844_s5 = scalar_lea.vmem %s3636_s1, %s2421_s28  ;;  %s3640_s28 = smov 56   ;;  %vm556_vm6 = vcmask 195584   ;;  %vm558_vm7 = vcmask 228352  }
  0x17   : > { %v2849_v9 = vld [vmem:[%s2844_s5] sm:$0xff]  ;;  %v2852_v10 = vld [vmem:[%s2844_s5 + $0x10] sm:$0xff]  ;;  %v2883_v22 = vld [vmem:[%s2844_s5 + $0x8] sm:$0xff]  ;;  %s3641_s29 = smov 60   ;;  %vm560_vm8 = vcmask 261120   ;;  %vm562_vm9 = vcmask 293888  }
  0x18   : > { %v2846_v8 = vsub.s32 %v218_v6, %v220_v5  ;;  %v2855_v11 = vld [vmem:[%s2844_s5 + $0x20] sm:$0xff]  ;;  %v2858_v12 = vld [vmem:[%s2844_s5 + $0x30] sm:$0xff]  ;;  %v2878_v20 = vsub.s32 %v282_v7, %v220_v5  ;;  %v2892_v27 = vld [vmem:[%s2844_s5 + $0x18] sm:$0xff]  ;;  %vm564_vm10 = vcmask 326656   ;;  %vm566_vm11 = vcmask 359424   ;;  %s3644_s30 = smov 120  }
  0x19   : > { %v2861_v13 = vld [vmem:[%s2844_s5 + $0x40] sm:$0xff]  ;;  %v2864_v14 = vld [vmem:[%s2844_s5 + $0x50] sm:$0xff]  ;;  %v214_v15 = vcombine.low %v2849_v9, %v2855_v11  ;;  %v215_v16 = vcombine.high %v2849_v9, %v2855_v11  ;;  %v230_v19 = vcombine.low %v2852_v10, %v2858_v12  ;;  %v231_v21 = vcombine.high %v2852_v10, %v2858_v12  ;;  %v2895_v28 = vld [vmem:[%s2844_s5 + $0x28] sm:$0xff] }
  0x1a   : > { %v2871_v17 = vld [vmem:[%s2844_s5 + $0x60] sm:$0xff]  ;;  %v2874_v18 = vld [vmem:[%s2844_s5 + $0x70] sm:$0xff]  ;;  %v2898_v29 = vld [vmem:[%s2844_s5 + $0x38] sm:$0xff]  ;;  %v350_v36 = vcombine.low %v2883_v22, %v2895_v28  ;;  %vm568_vm12 = vcmask 392192   ;;  %vm570_vm13 = vcmask 424960   ;;  %vm572_vm14 = vcmask 457728  }
  0x1b   : > { %v222_v23 = vrot.slane %v214_v15, %v2846_v8  ;;  %v246_v24 = vcombine.low %v2861_v13, %v2871_v17  ;;  %v262_v25 = vcombine.low %v2864_v14, %v2874_v18  ;;  %v229_v26 = vrot.slane %v215_v16, %v2846_v8  ;;  %v2925_v54 = vld [vmem:[%s2844_s5 + $0x48] sm:$0xff]  ;;  %v2930_v57 = vld [vmem:[%s2844_s5 + $0x58] sm:$0xff] }
  0x1c   : > { %v238_v30 = vrot.slane %v230_v19, %v2846_v8  ;;  %v245_v31 = vrot.slane %v231_v21, %v2846_v8  ;;  %v247_v32 = vcombine.high %v2861_v13, %v2871_v17  ;;  %v263_v33 = vcombine.high %v2864_v14, %v2874_v18  ;;  %v2933_v58 = vld [vmem:[%s2844_s5 + $0x68] sm:$0xff]  ;;  %v2936_v59 = vld [vmem:[%s2844_s5 + $0x78] sm:$0xff]  ;;  %s3645_s5 = smov 124  }
  0x1d   : > { %v254_v34 = vrot.slane %v246_v24, %v2846_v8  ;;  %v270_v35 = vrot.slane %v262_v25, %v2846_v8  ;;  %v366_v37 = vcombine.low %v2892_v27, %v2898_v29  ;;  %v358_v60 = vrot.slane %v350_v36, %v2846_v8 }
  0x1e   : > { %v278_v38 = vcombine.low %v222_v23, %v238_v30  ;;  %v279_v39 = vcombine.high %v222_v23, %v238_v30  ;;  %v261_v40 = vrot.slane %v247_v32, %v2846_v8  ;;  %v277_v41 = vrot.slane %v263_v33, %v2846_v8 }
  0x1f   : > { %v310_v42 = vcombine.low %v254_v34, %v270_v35  ;;  %v311_v43 = vcombine.high %v254_v34, %v270_v35  ;;  %v294_v44 = vcombine.low %v229_v26, %v245_v31  ;;  %v295_v45 = vcombine.high %v229_v26, %v245_v31 }
  0x20   : > { %v2915_v46 = vrot.slane %v278_v38, %v2878_v20  ;;  %v293_v47 = vrot.slane %v279_v39, %v2878_v20  ;;  %v326_v48 = vcombine.low %v261_v40, %v277_v41  ;;  %v327_v49 = vcombine.high %v261_v40, %v277_v41 }
  0x21   : > { %v2919_v50 = vrot.slane %v310_v42, %v2878_v20  ;;  %v325_v51 = vrot.slane %v311_v43, %v2878_v20  ;;  %v302_v52 = vrot.slane %v294_v44, %v2878_v20  ;;  %v309_v53 = vrot.slane %v295_v45, %v2878_v20 }
  0x22   : > { %v334_v55 = vrot.slane %v326_v48, %v2878_v20  ;;  %v341_v56 = vrot.slane %v327_v49, %v2878_v20  ;;  %v374_v61 = vrot.slane %v366_v37, %v2846_v8  ;;  %v382_v4 = vcombine.low %v2925_v54, %v2933_v58 }
  0x23   : > { %v343_v62 = vcombine.high %v2915_v46, %v2919_v50  ;;  %v342_v63 = vcombine.low %v2915_v46, %v2919_v50  ;;  %v345_v0 = vcombine.high %v293_v47, %v325_v51  ;;  %v344_v1 = vcombine.low %v293_v47, %v325_v51 }
  0x24   : > { %v346_v2 = vcombine.low %v302_v52, %v334_v55  ;;  %v347_v3 = vcombine.high %v302_v52, %v334_v55  ;;  %v398_v5 = vcombine.low %v2930_v57, %v2936_v59  ;;  %v414_v6 = vcombine.low %v358_v60, %v374_v61 }
  0x25   : > { %487 = vrot.lane.b32.xlu0 %v343_v62, %s2732_s6  ;;  %495 = vrot.lane.b32.xlu1 %v345_v0, %s2733_s7  ;;  %v348_v7 = vcombine.low %v309_v53, %v341_v56  ;;  %v351_v15 = vcombine.high %v2883_v22, %v2895_v28  ;;  %v367_v16 = vcombine.high %v2892_v27, %v2898_v29  ;;  %v2740_v52 = vmov 0.0  }
  0x26   : > { %v383_v19 = vcombine.high %v2925_v54, %v2933_v58  ;;  %v390_v21 = vrot.slane %v382_v4, %v2846_v8  ;;  %v406_v23 = vrot.slane %v398_v5, %v2846_v8  ;;  %v415_v24 = vcombine.high %v358_v60, %v374_v61  ;;  %2477 = vmatprep.subr.mxu1 %v2740_v52 }
  0x27   : > { %v399_v25 = vcombine.high %v2930_v57, %v2936_v59  ;;  %v422_v26 = vrot.slane %v414_v6, %v2878_v20  ;;  %v365_v30 = vrot.slane %v351_v15, %v2846_v8  ;;  %v381_v31 = vrot.slane %v367_v16, %v2846_v8  ;;  %2517 = vmatprep.subr.mxu0 %v2740_v52 }
  0x28   : > { %v397_v32 = vrot.slane %v383_v19, %v2846_v8  ;;  %v446_v33 = vcombine.low %v390_v21, %v406_v23  ;;  %v447_v34 = vcombine.high %v390_v21, %v406_v23  ;;  %v349_v37 = vcombine.high %v309_v53, %v341_v56  ;;  %2479 = vmatprep.mubr.msk.f32.mxu1 %vm2743_vm1, %v2740_v52 }
  0x29   : > { %491 = vrot.lane.b32.xlu0 %v344_v1, %s2734_s8  ;;  %499 = vrot.lane.b32.xlu1 %v346_v2, %s2735_s9  ;;  %v413_v35 = vrot.slane %v399_v25, %v2846_v8  ;;  %v429_v38 = vrot.slane %v415_v24, %v2878_v20  ;;  %v430_v39 = vcombine.low %v365_v30, %v381_v31  ;;  %vm574_vm15 = vcmask 490496  }
  0x2a   : > { %v454_v36 = vrot.slane %v446_v33, %v2878_v20  ;;  %v461_v41 = vrot.slane %v447_v34, %v2878_v20  ;;  %v431_v44 = vcombine.high %v365_v30, %v381_v31  ;;  %v576_v60 = vcombine.low %v2740_v52, %v2740_v52  ;;  %2518 = vmatpush3.xpose.msk.msra.mxu0 %vm546_vm0, %v2936_v59 }
  0x2b   : > { %v462_v42 = vcombine.low %v397_v32, %v413_v35  ;;  %v438_v43 = vrot.slane %v430_v39, %v2878_v20  ;;  %v463_v45 = vcombine.high %v397_v32, %v413_v35  ;;  %v577_v61 = vcombine.high %v2740_v52, %v2740_v52  ;;  %2519 = vmatprep.subr.mxu0 %v2740_v52 }
  0x2c   : > { %v478_v40 = vcombine.low %v422_v26, %v454_v36  ;;  %v479_v47 = vcombine.high %v422_v26, %v454_v36  ;;  %v480_v48 = vcombine.low %v429_v38, %v461_v41  ;;  %v445_v51 = vrot.slane %v431_v44, %v2878_v20  ;;  %2549 = vmatprep.mubr.msk.f32.mxu0 %vm2743_vm1, %v2740_v52 }
  0x2d   : > { %503 = vrot.lane.b32.xlu0 %v347_v3, %s2736_s10  ;;  %507 = vrot.lane.b32.xlu1 %v348_v7, %s2737_s11  ;;  %v470_v49 = vrot.slane %v462_v42, %v2878_v20  ;;  %v481_v53 = vcombine.high %v429_v38, %v461_v41  ;;  %v477_v56 = vrot.slane %v463_v45, %v2878_v20 }
  0x2e   : > { %v584_v62 = vrot.slane %v576_v60, %v2846_v8  ;;  %v591_v2 = vrot.slane %v577_v61, %v2846_v8  ;;  %2520 = vmatpush3.xpose.msk.msra.mxu0 %vm546_vm0, %v2874_v18 }
  0x2f   : > { %v482_v55 = vcombine.low %v438_v43, %v470_v49  ;;  %v483_v0 = vcombine.high %v438_v43, %v470_v49  ;;  %v484_v1 = vcombine.low %v445_v51, %v477_v56  ;;  %2521 = vmatprep.subr.mxu0 %v2740_v52  ;;  %v485_v6 = vcombine.high %v445_v51, %v477_v56 }
  0x30   : > { %v592_v3 = vcombine.low %v584_v62, %v584_v62  ;;  %v593_v4 = vcombine.high %v584_v62, %v584_v62  ;;  %v608_v15 = vcombine.low %v591_v2, %v591_v2  ;;  %v609_v19 = vcombine.high %v591_v2, %v591_v2 }
  0x31   : > { %511 = vrot.lane.b32.xlu0 %v349_v37, %s2738_s12  ;;  %515 = vrot.lane.b32.xlu1 %v478_v40, %s2739_s13 }
  0x32   : > { %v600_v5 = vrot.slane %v592_v3, %v2878_v20  ;;  %v607_v7 = vrot.slane %v593_v4, %v2878_v20  ;;  %2522 = vmatpush3.xpose.msk.msra.mxu0 %vm546_vm0, %v2933_v58  ;;  %v616_v24 = vrot.slane %v608_v15, %v2878_v20  ;;  %v623_v30 = vrot.slane %v609_v19, %v2878_v20  ;;  %v3087_v4 = vld [vmem:[%s3635_s0] sm:$0xff] }
  0x33   : > { %2523 = vmatprep.subr.mxu0 %v2740_v52 }
  0x34   : > { %v625_v16 = vcombine.high %v600_v5, %v600_v5  ;;  %v626_v21 = vcombine.low %v607_v7, %v607_v7  ;;  %v627_v23 = vcombine.high %v607_v7, %v607_v7  ;;  %v628_v25 = vcombine.low %v616_v24, %v616_v24 }
  0x35   : > { %519 = vrot.lane.b32.xlu0 %v479_v47, %s2741_s14  ;;  %523 = vrot.lane.b32.xlu1 %v480_v48, %s2742_s20  ;;  %v629_v26 = vcombine.high %v616_v24, %v616_v24  ;;  %v630_v31 = vcombine.low %v623_v30, %v623_v30  ;;  %v631_v32 = vcombine.high %v623_v30, %v623_v30 }
  0x36   : > { %2524 = vmatpush3.xpose.msk.msra.mxu0 %vm546_vm0, %v2871_v17  ;;  %v3026_v33 = vcombine.low %v600_v5, %v600_v5 }
  0x37   : > { %2525 = vmatprep.subr.mxu0 %v2740_v52 }
  0x39   : > { %527 = vrot.lane.b32.xlu0 %v481_v53, %s2744_s22  ;;  %531 = vrot.lane.b32.xlu1 %v482_v55, %s3642_s23 }
  0x3a   : > { %2526 = vmatpush3.xpose.msk.msra.mxu0 %vm546_vm0, %v2930_v57 }
  0x3b   : > { %2527 = vmatprep.subr.mxu0 %v2740_v52 }
  0x3d   : > { %535 = vrot.lane.b32.xlu0 %v483_v0, %s3643_s27  ;;  %539 = vrot.lane.b32.xlu1 %v484_v1, %s3640_s28 }
  0x3e   : > { %2528 = vmatpush3.xpose.msk.msra.mxu0 %vm546_vm0, %v2864_v14 }
  0x3f   : > { %2529 = vmatprep.subr.mxu0 %v2740_v52 }
  0x41   : > { %543 = vrot.lane.b32.xlu0 %v485_v6, %s3641_s29  ;;  %633 = vrot.lane.b32.xlu1 %v625_v16, %s2732_s6 }
  0x42   : > { %2530 = vmatpush3.xpose.msk.msra.mxu0 %vm546_vm0, %v2925_v54 }
  0x43   : > { %2531 = vmatprep.subr.mxu0 %v2740_v52 }
  0x45   : > { %637 = vrot.lane.b32.xlu0 %v626_v21, %s2734_s8  ;;  %641 = vrot.lane.b32.xlu1 %v627_v23, %s2733_s7 }
  0x46   : > { %2532 = vmatpush3.xpose.msk.msra.mxu0 %vm546_vm0, %v2861_v13 }
  0x47   : > { %2533 = vmatprep.subr.mxu0 %v2740_v52 }
  0x49   : > { %645 = vrot.lane.b32.xlu0 %v628_v25, %s2735_s9  ;;  %649 = vrot.lane.b32.xlu1 %v629_v26, %s2736_s10 }
  0x4a   : > { %2534 = vmatpush3.xpose.msk.msra.mxu0 %vm546_vm0, %v2898_v29 }
  0x4b   : > { %2535 = vmatprep.subr.mxu0 %v2740_v52 }
  0x4d   : > { %653 = vrot.lane.b32.xlu0 %v630_v31, %s2737_s11  ;;  %657 = vrot.lane.b32.xlu1 %v631_v32, %s2738_s12 }
  0x4e   : > { %2536 = vmatpush3.xpose.msk.msra.mxu0 %vm546_vm0, %v2858_v12 }
  0x4f   : > { %2537 = vmatprep.subr.mxu0 %v2740_v52 }
  0x51   : > { %661 = vrot.lane.b32.xlu0 %v3026_v33, %s2739_s13  ;;  %664 = vrot.lane.b32.xlu1 %v625_v16, %s2741_s14 }
  0x52   : > { %2538 = vmatpush3.xpose.msk.msra.mxu0 %vm546_vm0, %v2895_v28 }
  0x53   : > { %2539 = vmatprep.subr.mxu0 %v2740_v52 }
  0x55   : > { %667 = vrot.lane.b32.xlu0 %v626_v21, %s2742_s20  ;;  %670 = vrot.lane.b32.xlu1 %v627_v23, %s2744_s22 }
  0x56   : > { %2540 = vmatpush3.xpose.msk.msra.mxu0 %vm546_vm0, %v2855_v11 }
  0x57   : > { %2541 = vmatprep.subr.mxu0 %v2740_v52 }
  0x59   : > { %673 = vrot.lane.b32.xlu0 %v628_v25, %s3642_s23  ;;  %676 = vrot.lane.b32.xlu1 %v629_v26, %s3643_s27  ;;  %s3648_s23 = smov 104   ;;  %s3649_s27 = smov 108  }
  0x5a   : > { %2542 = vmatpush3.xpose.msk.msra.mxu0 %vm546_vm0, %v2892_v27 }
  0x5b   : > { %2543 = vmatprep.subr.mxu0 %v2740_v52 }
  0x5d   : > { %679 = vrot.lane.b32.xlu0 %v630_v31, %s3640_s28  ;;  %682 = vrot.lane.b32.xlu1 %v631_v32, %s3641_s29  ;;  %s3646_s28 = smov 112   ;;  %s3647_s29 = smov 116  }
  0x5e   : > { %2544 = vmatpush3.xpose.msk.msra.mxu0 %vm546_vm0, %v2852_v10 }
  0x5f   : > { %2545 = vmatprep.subr.mxu0 %v2740_v52 }
  0x62   : > { %2546 = vmatpush3.xpose.msk.msra.mxu0 %vm546_vm0, %v2883_v22 }
  0x63   : > { %2547 = vmatprep.subr.mxu0 %v2740_v52 }
  0x66   : > { %2548 = vmatpush3.xpose.msk.msra.mxu0 %vm546_vm0, %v2849_v9 }
  0x67   : > { %2557 = vmatprep.subr.mxu0 %v2740_v52 }
  0x97   : > { %v488_v34 = vpop.permute.xlu0 %487  ;;  %v496_v35 = vpop.permute.xlu1 %495 }
  0x98   : > { %v547_v36 = vsel %vm546_vm0, %v342_v63, %v488_v34 }
  0x9b   : > { %v492_v37 = vpop.permute.xlu0 %491  ;;  %v500_v38 = vpop.permute.xlu1 %499 }
  0x9c   : > { %v549_v39 = vsel %vm548_vm2, %v547_v36, %v492_v37 }
  0x9d   : > { %v551_v40 = vsel %vm550_vm3, %v549_v39, %v496_v35 }
  0x9e   : > { %v553_v41 = vsel %vm552_vm4, %v551_v40, %v500_v38 }
  0x9f   : > { %v504_v42 = vpop.permute.xlu0 %503  ;;  %v508_v43 = vpop.permute.xlu1 %507 }
  0xa0   : > { %v555_v44 = vsel %vm554_vm5, %v553_v41, %v504_v42 }
  0xa1   : > { %v557_v46 = vsel %vm556_vm6, %v555_v44, %v508_v43 }
  0xa3   : > { %v512_v50 = vpop.permute.xlu0 %511  ;;  %v516_v63 = vpop.permute.xlu1 %515 }
  0xa4   : > { %v559_v45 = vsel %vm558_vm7, %v557_v46, %v512_v50 }
  0xa5   : > { %v561_v47 = vsel %vm560_vm8, %v559_v45, %v516_v63 }
  0xa7   : > { %v520_v48 = vpop.permute.xlu0 %519  ;;  %v524_v49 = vpop.permute.xlu1 %523 }
  0xa8   : > { %v563_v51 = vsel %vm562_vm9, %v561_v47, %v520_v48 }
  0xa9   : > { %v565_v53 = vsel %vm564_vm10, %v563_v51, %v524_v49 }
  0xab   : > { %v528_v55 = vpop.permute.xlu0 %527  ;;  %v532_v56 = vpop.permute.xlu1 %531 }
  0xac   : > { %v567_v60 = vsel %vm566_vm11, %v565_v53, %v528_v55 }
  0xad   : > { %v569_v61 = vsel %vm568_vm12, %v567_v60, %v532_v56 }
  0xaf   : > { %v536_v62 = vpop.permute.xlu0 %535  ;;  %v540_v1 = vpop.permute.xlu1 %539 }
  0xb0   : > { %v571_v0 = vsel %vm570_vm13, %v569_v61, %v536_v62 }
  0xb1   : > { %v573_v2 = vsel %vm572_vm14, %v571_v0, %v540_v1 }
  0xb3   : > { %v544_v3 = vpop.permute.xlu0 %543  ;;  %v634_v6 = vpop.permute.xlu1 %633 }
  0xb4   : > { %v575_v5 = vsel %vm574_vm15, %v573_v2, %v544_v3  ;;  %v685_v7 = vsel %vm546_vm0, %v3026_v33, %v634_v6  ;;  %v3148_v3 = vmul.f32 0.05, %v2849_v9  ;;  %v3154_v6 = vmul.f32 0.05, %v2855_v11 }
  0xb5   : > { %2478 = vmatpush3.msra.mxu1 %v575_v5  ;;  %v3151_v5 = vmul.f32 0.05, %v2852_v10  ;;  %v3168_v9 = vmul.f32 0.05, %v2871_v17  ;;  %v3171_v11 = vmul.f32 0.05, %v2874_v18 }
  0xb6   : > { %2480 = vmatmul.mubr.msk.f32.vlgmr.msra.gmra.mxu1 %vm548_vm2, %v3087_v4  ;;  %2482 = vmatprep.subr.mxu1 %v2740_v52  ;;  %v3182_v17 = vmul.f32 0.05, %v2895_v28  ;;  %v3185_v18 = vmul.f32 0.05, %v2898_v29 }
  0xb7   : > { %2514 = vmatprep.mubr.msk.f32.mxu1 %vm2743_vm1, %v2740_v52  ;;  %v638_v15 = vpop.permute.xlu0 %637  ;;  %v642_v19 = vpop.permute.xlu1 %641 }
  0xb8   : > { %v686_v16 = vsel %vm548_vm2, %v685_v7, %v638_v15  ;;  %v3157_v7 = vmul.f32 0.05, %v2858_v12  ;;  %v3160_v15 = vmul.f32 0.05, %v2861_v13  ;;  %v3174_v12 = vmul.f32 0.05, %v2883_v22 }
  0xb9   : > { %v687_v21 = vsel %vm550_vm3, %v686_v16, %v642_v19  ;;  %v3188_v22 = vmul.f32 0.05, %v2925_v54 }
  0xbb   : > { %v646_v23 = vpop.permute.xlu0 %645  ;;  %v650_v25 = vpop.permute.xlu1 %649 }
  0xbc   : > { %v688_v24 = vsel %vm552_vm4, %v687_v21, %v646_v23  ;;  %v3165_v21 = vmul.f32 0.05, %v2864_v14  ;;  %v3179_v14 = vmul.f32 0.05, %v2892_v27 }
  0xbd   : > { %v689_v26 = vsel %vm554_vm5, %v688_v24, %v650_v25 }
  0xbf   : > { %v654_v30 = vpop.permute.xlu0 %653  ;;  %v658_v32 = vpop.permute.xlu1 %657 }
  0xc0   : > { %v690_v31 = vsel %vm556_vm6, %v689_v26, %v654_v30 }
  0xc1   : > { %v691_v34 = vsel %vm558_vm7, %v690_v31, %v658_v32 }
  0xc3   : > { %v662_v35 = vpop.permute.xlu0 %661  ;;  %v665_v36 = vpop.permute.xlu1 %664 }
  0xc4   : > { %v692_v33 = vsel %vm560_vm8, %v691_v34, %v662_v35 }
  0xc5   : > { %v693_v37 = vsel %vm562_vm9, %v692_v33, %v665_v36  ;;  %v3192_v33 = vmul.f32 0.05, %v2930_v57 }
  0xc7   : > { %v668_v38 = vpop.permute.xlu0 %667  ;;  %v671_v40 = vpop.permute.xlu1 %670 }
  0xc8   : > { %v694_v39 = vsel %vm564_vm10, %v693_v37, %v668_v38 }
  0xc9   : > { %v695_v41 = vsel %vm566_vm11, %v694_v39, %v671_v40  ;;  %v3199_v40 = vmul.f32 0.05, %v2936_v59 }
  0xcb   : > { %v674_v42 = vpop.permute.xlu0 %673  ;;  %v677_v44 = vpop.permute.xlu1 %676 }
  0xcc   : > { %v696_v43 = vsel %vm568_vm12, %v695_v41, %v674_v42  ;;  %v3202_v41 = vmul.f32 0.05, %v2933_v58 }
  0xcd   : > { %v697_v46 = vsel %vm570_vm13, %v696_v43, %v677_v44 }
  0xcf   : > { %v680_v50 = vpop.permute.xlu0 %679  ;;  %v683_v45 = vpop.permute.xlu1 %682 }
  0xd0   : > { %v698_v63 = vsel %vm572_vm14, %v697_v46, %v680_v50 }
  0xd1   : > { %v3111_v47 = vsel %vm574_vm15, %v698_v63, %v683_v45 }
 0x176   : > { %v769_v48 = vpop.f32.mrf.mxu1 }
 0x177   : > { %v3114_v49 = vadd.f32 %v769_v48, %v3111_v47 }
 0x178   : > { %v2481_v51 = vpop.f32.mrf.mxu1 }
 0x179   : > { %777 = vrot.lane.b32.xlu1 %v3114_v49, %s3644_s30  ;;  %774 = vrot.lane.b32.xlu0 %v3114_v49, %s3645_s5  ;;  %s3650_s30 = smov 96   ;;  %s3651_s5 = smov 100  }
 0x17d   : > { %783 = vrot.lane.b32.xlu1 %v3114_v49, %s3646_s28  ;;  %780 = vrot.lane.b32.xlu0 %v3114_v49, %s3647_s29  ;;  %s3652_s28 = smov 88   ;;  %s2758_s29 = smov 92  }
 0x181   : > { %789 = vrot.lane.b32.xlu1 %v3114_v49, %s3648_s23  ;;  %786 = vrot.lane.b32.xlu0 %v3114_v49, %s3649_s27  ;;  %s2759_s23 = smov 80   ;;  %s2760_s27 = smov 84  }
 0x185   : > { %795 = vrot.lane.b32.xlu1 %v3114_v49, %s3650_s30  ;;  %792 = vrot.lane.b32.xlu0 %v3114_v49, %s3651_s5  ;;  %s2761_s30 = smov 72   ;;  %s2762_s5 = smov 76  }
 0x189   : > { %801 = vrot.lane.b32.xlu1 %v3114_v49, %s3652_s28  ;;  %798 = vrot.lane.b32.xlu0 %v3114_v49, %s2758_s29  ;;  %s2763_s28 = smov 68  }
 0x18d   : > { %807 = vrot.lane.b32.xlu1 %v3114_v49, %s2759_s23  ;;  %804 = vrot.lane.b32.xlu0 %v3114_v49, %s2760_s27 }
 0x191   : > { %813 = vrot.lane.b32.xlu1 %v3114_v49, %s2761_s30  ;;  %810 = vrot.lane.b32.xlu0 %v3114_v49, %s2762_s5 }
 0x195   : > { %816 = vrot.lane.b32.xlu0 %v3114_v49, %s2763_s28 }
 0x1eb   : > { %v778_v53 = vpop.permute.xlu1 %777  ;;  %v775_v55 = vpop.permute.xlu0 %774 }
 0x1ec   : > { %v819_v62 = vcombine.low %v3114_v49, %v778_v53  ;;  %v820_v16 = vcombine.high %v3114_v49, %v778_v53 }
 0x1ee   : > { %v827_v13 = vrot.slane %v819_v62, %v2846_v8  ;;  %v834_v32 = vrot.slane %v820_v16, %v2846_v8 }
 0x1ef   : > { %v784_v56 = vpop.permute.xlu1 %783  ;;  %v781_v60 = vpop.permute.xlu0 %780 }
 0x1f0   : > { %v835_v61 = vcombine.low %v775_v55, %v781_v60  ;;  %v836_v0 = vcombine.high %v775_v55, %v781_v60 }
 0x1f2   : > { %v843_v19 = vrot.slane %v835_v61, %v2846_v8  ;;  %v850_v24 = vrot.slane %v836_v0, %v2846_v8 }
 0x1f3   : > { %v790_v1 = vpop.permute.xlu1 %789  ;;  %v787_v2 = vpop.permute.xlu0 %786 }
 0x1f4   : > { %v851_v10 = vcombine.low %v784_v56, %v790_v1  ;;  %v852_v23 = vcombine.high %v784_v56, %v790_v1  ;;  %v883_v34 = vcombine.low %v827_v13, %v843_v19  ;;  %v884_v35 = vcombine.high %v827_v13, %v843_v19 }
 0x1f5   : > { %v899_v29 = vcombine.low %v834_v32, %v850_v24  ;;  %v900_v38 = vcombine.high %v834_v32, %v850_v24 }
 0x1f6   : > { %v859_v27 = vrot.slane %v851_v10, %v2846_v8  ;;  %v866_v28 = vrot.slane %v852_v23, %v2846_v8  ;;  %v891_v46 = vrot.slane %v883_v34, %v2878_v20  ;;  %v898_v50 = vrot.slane %v884_v35, %v2878_v20 }
 0x1f7   : > { %v796_v25 = vpop.permute.xlu1 %795  ;;  %v793_v26 = vpop.permute.xlu0 %792  ;;  %v907_v58 = vrot.slane %v899_v29, %v2878_v20  ;;  %v914_v53 = vrot.slane %v900_v38, %v2878_v20 }
 0x1f8   : > { %v867_v30 = vcombine.low %v787_v2, %v793_v26  ;;  %v868_v31 = vcombine.high %v787_v2, %v793_v26 }
 0x1fa   : > { %v875_v36 = vrot.slane %v867_v30, %v2846_v8  ;;  %v882_v37 = vrot.slane %v868_v31, %v2846_v8 }
 0x1fb   : > { %v802_v39 = vpop.permute.xlu1 %801  ;;  %v799_v54 = vpop.permute.xlu0 %798 }
 0x1fc   : > { %v915_v57 = vcombine.low %v859_v27, %v875_v36  ;;  %v916_v42 = vcombine.high %v859_v27, %v875_v36  ;;  %v931_v43 = vcombine.low %v866_v28, %v882_v37  ;;  %v932_v44 = vcombine.high %v866_v28, %v882_v37 }
 0x1fd   : > { %v955_v63 = vcombine.low %v796_v25, %v802_v39  ;;  %v956_v45 = vcombine.high %v796_v25, %v802_v39 }
 0x1fe   : > { %v923_v48 = vrot.slane %v915_v57, %v2878_v20  ;;  %v930_v49 = vrot.slane %v916_v42, %v2878_v20  ;;  %v939_v59 = vrot.slane %v931_v43, %v2878_v20  ;;  %v946_v51 = vrot.slane %v932_v44, %v2878_v20 }
 0x1ff   : > { %v963_v55 = vrot.slane %v955_v63, %v2846_v8  ;;  %v970_v56 = vrot.slane %v956_v45, %v2846_v8  ;;  %v808_v60 = vpop.permute.xlu1 %807  ;;  %v805_v61 = vpop.permute.xlu0 %804 }
 0x200   : > { %v947_v62 = vcombine.low %v891_v46, %v923_v48  ;;  %v948_v0 = vcombine.high %v891_v46, %v923_v48  ;;  %v949_v1 = vcombine.low %v898_v50, %v930_v49  ;;  %v950_v2 = vcombine.high %v898_v50, %v930_v49 }
 0x201   : > { %v951_v16 = vcombine.low %v907_v58, %v939_v59  ;;  %v952_v19 = vcombine.high %v907_v58, %v939_v59  ;;  %v953_v10 = vcombine.low %v914_v53, %v946_v51  ;;  %v954_v23 = vcombine.high %v914_v53, %v946_v51 }
 0x202   : > { %v1107_v13 = vmul.f32 0.95, %v947_v62  ;;  %v1109_v24 = vmul.f32 0.95, %v948_v0  ;;  %v1111_v25 = vmul.f32 0.95, %v949_v1  ;;  %v971_v26 = vcombine.low %v799_v54, %v805_v61 }
 0x203   : > { %v1113_v30 = vmul.f32 0.95, %v950_v2  ;;  %v1115_v31 = vmul.f32 0.95, %v951_v16  ;;  %v1117_v32 = vmul.f32 0.95, %v952_v19  ;;  %v972_v34 = vcombine.high %v799_v54, %v805_v61  ;;  %v811_v35 = vpop.permute.xlu0 %810  ;;  %v814_v29 = vpop.permute.xlu1 %813 }
 0x204   : > { %v1119_v27 = vmul.f32 0.95, %v953_v10  ;;  %v1121_v28 = vmul.f32 0.95, %v954_v23  ;;  %v3215_v36 = vadd.f32 %v1107_v13, %v3148_v3  ;;  %v3218_v37 = vadd.f32 %v1109_v24, %v3151_v5 }
 0x205   : > { %v3221_v38 = vadd.f32 %v1111_v25, %v3154_v6  ;;  %v3224_v39 = vadd.f32 %v1113_v30, %v3157_v7  ;;  %v3227_v57 = vadd.f32 %v1115_v31, %v3160_v15  ;;  %v3230_v54 = vadd.f32 %v1117_v32, %v3165_v21 }
 0x206   : > { %v3233_v42 = vadd.f32 %v1119_v27, %v3168_v9  ;;  %v3236_v43 = vadd.f32 %v1121_v28, %v3171_v11  ;;  %v979_v44 = vrot.slane %v971_v26, %v2846_v8  ;;  %v986_v46 = vrot.slane %v972_v34, %v2846_v8 }
 0x207   : > { %v987_v50 = vcombine.low %v808_v60, %v814_v29  ;;  %v988_v63 = vcombine.high %v808_v60, %v814_v29  ;;  %v817_v45 = vpop.permute.xlu0 %816  ;;  %v1383_v48 = vcombine.low %v3215_v36, %v3221_v38  ;;  %v1399_v49 = vcombine.low %v3218_v37, %v3224_v39 }
 0x208   : > { %v1019_v59 = vcombine.low %v963_v55, %v979_v44  ;;  %v1020_v51 = vcombine.high %v963_v55, %v979_v44  ;;  %v1035_v58 = vcombine.low %v970_v56, %v986_v46  ;;  %v1036_v53 = vcombine.high %v970_v56, %v986_v46 }
 0x209   : > { %v995_v61 = vrot.slane %v987_v50, %v2846_v8  ;;  %v1002_v62 = vrot.slane %v988_v63, %v2846_v8  ;;  %v1003_v0 = vcombine.low %v811_v35, %v817_v45  ;;  %v1004_v1 = vcombine.high %v811_v35, %v817_v45 }
 0x20a   : > { %v1027_v2 = vrot.slane %v1019_v59, %v2878_v20  ;;  %v1034_v60 = vrot.slane %v1020_v51, %v2878_v20  ;;  %v1043_v16 = vrot.slane %v1035_v58, %v2878_v20  ;;  %v1050_v19 = vrot.slane %v1036_v53, %v2878_v20 }
 0x20b   : > { %v1011_v10 = vrot.slane %v1003_v0, %v2846_v8  ;;  %v1018_v55 = vrot.slane %v1004_v1, %v2846_v8  ;;  %v1391_v56 = vrot.slane %v1383_v48, %v2846_v8  ;;  %v1407_v23 = vrot.slane %v1399_v49, %v2846_v8 }
 0x20c   : > { %v1415_v13 = vcombine.low %v3227_v57, %v3233_v42  ;;  %v1431_v24 = vcombine.low %v3230_v54, %v3236_v43  ;;  %v1384_v25 = vcombine.high %v3215_v36, %v3221_v38  ;;  %v1400_v26 = vcombine.high %v3218_v37, %v3224_v39 }
 0x20d   : > { %v1051_v30 = vcombine.low %v995_v61, %v1011_v10  ;;  %v1052_v31 = vcombine.high %v995_v61, %v1011_v10  ;;  %v1067_v32 = vcombine.low %v1002_v62, %v1018_v55  ;;  %v1068_v34 = vcombine.high %v1002_v62, %v1018_v55 }
 0x20e   : > { %v1423_v35 = vrot.slane %v1415_v13, %v2846_v8  ;;  %v1439_v27 = vrot.slane %v1431_v24, %v2846_v8  ;;  %v1448_v28 = vcombine.high %v1391_v56, %v1407_v23  ;;  %v1447_v29 = vcombine.low %v1391_v56, %v1407_v23 }
 0x20f   : > { %v1059_v44 = vrot.slane %v1051_v30, %v2878_v20  ;;  %v1066_v46 = vrot.slane %v1052_v31, %v2878_v20  ;;  %v1075_v50 = vrot.slane %v1067_v32, %v2878_v20  ;;  %v1082_v63 = vrot.slane %v1068_v34, %v2878_v20 }
 0x210   : > { %v1462_v45 = vrot.slane %v1448_v28, %v2878_v20  ;;  %v1480_v48 = vcombine.high %v1423_v35, %v1439_v27  ;;  %v3270_v49 = vrot.slane %v1447_v29, %v2878_v20  ;;  %v1479_v59 = vcombine.low %v1423_v35, %v1439_v27 }
 0x211   : > { %v1083_v51 = vcombine.low %v1027_v2, %v1059_v44  ;;  %v1084_v58 = vcombine.high %v1027_v2, %v1059_v44  ;;  %v1085_v53 = vcombine.low %v1034_v60, %v1066_v46  ;;  %v1086_v61 = vcombine.high %v1034_v60, %v1066_v46 }
 0x212   : > { %v1087_v62 = vcombine.low %v1043_v16, %v1075_v50  ;;  %v1088_v0 = vcombine.high %v1043_v16, %v1075_v50  ;;  %v1089_v1 = vcombine.low %v1050_v19, %v1082_v63  ;;  %v1090_v10 = vcombine.high %v1050_v19, %v1082_v63 }
 0x213   : > { %v1108_v55 = vmul.f32 0.95, %v1083_v51  ;;  %v1110_v56 = vmul.f32 0.95, %v1084_v58  ;;  %v1112_v23 = vmul.f32 0.95, %v1085_v53  ;;  %v1494_v13 = vrot.slane %v1480_v48, %v2878_v20 }
 0x214   : > { %v1114_v24 = vmul.f32 0.95, %v1086_v61  ;;  %v1116_v30 = vmul.f32 0.95, %v1087_v62  ;;  %v1118_v31 = vmul.f32 0.95, %v1088_v0  ;;  %v3274_v32 = vrot.slane %v1479_v59, %v2878_v20 }
 0x215   : > { %v1120_v34 = vmul.f32 0.95, %v1089_v1  ;;  %v1122_v35 = vmul.f32 0.95, %v1090_v10  ;;  %v3277_v2 = vadd.f32 %v1108_v55, %v3174_v12  ;;  %v3280_v60 = vadd.f32 %v1110_v56, %v3179_v14 }
 0x216   : > { %v3283_v16 = vadd.f32 %v1112_v23, %v3182_v17  ;;  %v3286_v19 = vadd.f32 %v1114_v24, %v3185_v18  ;;  %v3289_v27 = vadd.f32 %v1116_v30, %v3188_v22  ;;  %v3292_v28 = vadd.f32 %v1118_v31, %v3192_v33 }
 0x217   : > { %v1513_v29 = vcombine.low %v1462_v45, %v1494_v13  ;;  %v1512_v44 = vcombine.high %v3270_v49, %v3274_v32  ;;  %v1398_v46 = vrot.slane %v1384_v25, %v2846_v8  ;;  %v1414_v50 = vrot.slane %v1400_v26, %v2846_v8 }
 0x218   : > { %v1416_v63 = vcombine.high %v3227_v57, %v3233_v42  ;;  %v1432_v48 = vcombine.high %v3230_v54, %v3236_v43  ;;  %v1138_v59 = vadd.f32 %v1122_v35, %v3199_v40  ;;  %v1514_v58 = vcombine.high %v1462_v45, %v1494_v13 }
 0x219   : > { %1660 = vrot.lane.b32.xlu0 %v1513_v29, %s2734_s8  ;;  %1656 = vrot.lane.b32.xlu1 %v1512_v44, %s2732_s6  ;;  %v1463_v51 = vcombine.low %v1398_v46, %v1414_v50  ;;  %v1136_v53 = vadd.f32 %v1120_v34, %v3202_v41  ;;  %v1519_v61 = vcombine.low %v3277_v2, %v3283_v16  ;;  %s3655_s8 = smov 52   ;;  %s3664_s6 = smov 116  }
 0x21a   : > { %v1430_v25 = vrot.slane %v1416_v63, %v2846_v8  ;;  %v1446_v26 = vrot.slane %v1432_v48, %v2846_v8  ;;  %2483 = vmatpush3.xpose.msk.msra.mxu1 %vm546_vm0, %v1138_v59  ;;  %v1535_v62 = vcombine.low %v3280_v60, %v3286_v19  ;;  %v1464_v1 = vcombine.high %v1398_v46, %v1414_v50 }
 0x21b   : > { %v1471_v0 = vrot.slane %v1463_v51, %v2878_v20  ;;  %2484 = vmatprep.subr.mxu1 %v2740_v52  ;;  %v1551_v45 = vcombine.low %v3289_v27, %v1136_v53  ;;  %v1567_v10 = vcombine.low %v3292_v28, %v1138_v59  ;;  %v1527_v23 = vrot.slane %v1519_v61, %v2846_v8 }
 0x21c   : > { %v1495_v55 = vcombine.low %v1430_v25, %v1446_v26  ;;  %v1496_v56 = vcombine.high %v1430_v25, %v1446_v26  ;;  %v1543_v13 = vrot.slane %v1535_v62, %v2846_v8  ;;  %v1520_v29 = vcombine.high %v3277_v2, %v3283_v16 }
 0x21d   : > { %1664 = vrot.lane.b32.xlu1 %v1514_v58, %s2733_s7  ;;  %v1559_v24 = vrot.slane %v1551_v45, %v2846_v8  ;;  %v1575_v30 = vrot.slane %v1567_v10, %v2846_v8  ;;  %v1536_v44 = vcombine.high %v3280_v60, %v3286_v19  ;;  %v1478_v50 = vrot.slane %v1464_v1, %v2878_v20 }
 0x21e   : > { %v1503_v31 = vrot.slane %v1495_v55, %v2878_v20  ;;  %2485 = vmatpush3.xpose.msk.msra.mxu1 %vm546_vm0, %v3236_v43  ;;  %v1583_v34 = vcombine.low %v1527_v23, %v1543_v13  ;;  %v1510_v63 = vrot.slane %v1496_v56, %v2878_v20  ;;  %v1552_v58 = vcombine.high %v3289_v27, %v1136_v53 }
 0x21f   : > { %2486 = vmatprep.subr.mxu1 %v2740_v52  ;;  %v1615_v35 = vcombine.low %v1559_v24, %v1575_v30  ;;  %v1568_v25 = vcombine.high %v3292_v28, %v1138_v59  ;;  %v1584_v26 = vcombine.high %v1527_v23, %v1543_v13  ;;  %v1616_v61 = vcombine.high %v1559_v24, %v1575_v30 }
 0x220   : > { %v1515_v46 = vcombine.low %v1471_v0, %v1503_v31  ;;  %v1516_v48 = vcombine.high %v1471_v0, %v1503_v31  ;;  %v1591_v51 = vrot.slane %v1583_v34, %v2878_v20  ;;  %v1534_v62 = vrot.slane %v1520_v29, %v2846_v8  ;;  %v213_v31 = vld [vmem:[%s3637_s2] sm:$0xff] }
 0x221   : > { %v1623_v43 = vrot.slane %v1615_v35, %v2878_v20  ;;  %v1550_v0 = vrot.slane %v1536_v44, %v2846_v8  ;;  %v1517_v1 = vcombine.low %v1478_v50, %v1510_v63  ;;  %v1518_v45 = vcombine.high %v1478_v50, %v1510_v63  ;;  %2550 = vmatmul.mubr.msk.f32.vlgmr.msra.gmra.mxu0 %vm546_vm0, %v213_v31 }
 0x222   : > { %1668 = vrot.lane.b32.xlu0 %v1515_v46, %s2735_s9  ;;  %1672 = vrot.lane.b32.xlu1 %v1516_v48, %s2736_s10  ;;  %v1566_v10 = vrot.slane %v1552_v58, %v2846_v8  ;;  %v1582_v55 = vrot.slane %v1568_v25, %v2846_v8  ;;  %v1511_v56 = vcombine.low %v3270_v49, %v3274_v32  ;;  %s3656_s9 = smov 48   ;;  %s3657_s10 = smov 60  }
 0x223   : > { %2487 = vmatpush3.xpose.msk.msra.mxu1 %vm546_vm0, %v1136_v53  ;;  %v1648_v59 = vcombine.high %v1591_v51, %v1623_v43  ;;  %v1647_v53 = vcombine.low %v1591_v51, %v1623_v43  ;;  %v1598_v23 = vrot.slane %v1584_v26, %v2878_v20  ;;  %v1630_v13 = vrot.slane %v1616_v61, %v2878_v20 }
 0x224   : > { %2488 = vmatprep.subr.mxu1 %v2740_v52  ;;  %v1599_v24 = vcombine.low %v1534_v62, %v1550_v0  ;;  %v1631_v30 = vcombine.low %v1566_v10, %v1582_v55  ;;  %v1600_v44 = vcombine.high %v1534_v62, %v1550_v0  ;;  %v1632_v46 = vcombine.high %v1566_v10, %v1582_v55 }
 0x225   : > { %v1650_v34 = vcombine.high %v1598_v23, %v1630_v13  ;;  %v1649_v35 = vcombine.low %v1598_v23, %v1630_v13  ;;  %2589 = vmatprep.mubr.msk.f32.mxu0 %vm2743_vm1, %v2740_v52 }
 0x226   : > { %1676 = vrot.lane.b32.xlu0 %v1517_v1, %s2737_s11  ;;  %1680 = vrot.lane.b32.xlu1 %v1518_v45, %s2738_s12  ;;  %v1639_v29 = vrot.slane %v1631_v30, %v2878_v20  ;;  %v1614_v63 = vrot.slane %v1600_v44, %v2878_v20  ;;  %v1646_v48 = vrot.slane %v1632_v46, %v2878_v20  ;;  %s3658_s11 = smov 56   ;;  %s2418_s12 = sshll.u32 %s2812_s19, 7 }
 0x227   : > { %2489 = vmatpush3.xpose.msk.msra.mxu1 %vm546_vm0, %v3233_v42  ;;  %v1607_v42 = vrot.slane %v1599_v24, %v2878_v20 }
 0x228   : > { %2490 = vmatprep.subr.mxu1 %v2740_v52  ;;  %v1654_v51 = vcombine.high %v1614_v63, %v1646_v48  ;;  %v1653_v43 = vcombine.low %v1614_v63, %v1646_v48 }
 0x229   : > { %v1651_v50 = vcombine.low %v1607_v42, %v1639_v29 }
 0x22a   : > { %1688 = vrot.lane.b32.xlu1 %v1648_v59, %s2741_s14  ;;  %1684 = vrot.lane.b32.xlu0 %v1647_v53, %s2739_s13  ;;  %s3659_s14 = smov 96  }
 0x22b   : > { %2491 = vmatpush3.xpose.msk.msra.mxu1 %vm546_vm0, %v3292_v28  ;;  %v1652_v28 = vcombine.high %v1607_v42, %v1639_v29 }
 0x22c   : > { %2492 = vmatprep.subr.mxu1 %v2740_v52 }
 0x22e   : > { %1696 = vrot.lane.b32.xlu1 %v1650_v34, %s2744_s22  ;;  %1692 = vrot.lane.b32.xlu0 %v1649_v35, %s2742_s20  ;;  %s3660_s20 = smov 88   ;;  %s3661_s22 = smov 120  }
 0x22f   : > { %2493 = vmatpush3.xpose.msk.msra.mxu1 %vm546_vm0, %v3230_v54 }
 0x230   : > { %2494 = vmatprep.subr.mxu1 %v2740_v52 }
 0x232   : > { %1704 = vrot.lane.b32.xlu1 %v1652_v28, %s3655_s8  ;;  %1700 = vrot.lane.b32.xlu0 %v1651_v50, %s3656_s9 }
 0x233   : > { %2495 = vmatpush3.xpose.msk.msra.mxu1 %vm546_vm0, %v3289_v27 }
 0x234   : > { %2496 = vmatprep.subr.mxu1 %v2740_v52 }
 0x236   : > { %1712 = vrot.lane.b32.xlu1 %v1654_v51, %s3657_s10  ;;  %1708 = vrot.lane.b32.xlu0 %v1653_v43, %s3658_s11  ;;  %s188_s10 = sand.u32 1, %s2720_s16  }
 0x237   : > { %2497 = vmatpush3.xpose.msk.msra.mxu1 %vm546_vm0, %v3227_v57  ;;  %s2359_s11 = sshll.u32 %s188_s10, 3 }
 0x238   : > { %2498 = vmatprep.subr.mxu1 %v2740_v52  ;;  %s190_s13 = scalar_lea.vmem [#allocation2], %s2359_s11 }
 0x23b   : > { %2499 = vmatpush3.xpose.msk.msra.mxu1 %vm546_vm0, %v3286_v19 }
 0x23c   : > { %2500 = vmatprep.subr.mxu1 %v2740_v52 }
 0x23f   : > { %2501 = vmatpush3.xpose.msk.msra.mxu1 %vm546_vm0, %v3224_v39 }
 0x240   : > { %2502 = vmatprep.subr.mxu1 %v2740_v52 }
 0x243   : > { %2503 = vmatpush3.xpose.msk.msra.mxu1 %vm546_vm0, %v3283_v16 }
 0x244   : > { %2504 = vmatprep.subr.mxu1 %v2740_v52 }
 0x247   : > { %2505 = vmatpush3.xpose.msk.msra.mxu1 %vm546_vm0, %v3221_v38  ;;  %v2363_v38 = vld [vmem:[%s3637_s2 + $0x8] sm:$0xff] }
 0x248   : > { %2506 = vmatprep.subr.mxu1 %v2740_v52 }
 0x24b   : > { %2507 = vmatpush3.xpose.msk.msra.mxu1 %vm546_vm0, %v3280_v60 }
 0x24c   : > { %2508 = vmatprep.subr.mxu1 %v2740_v52 }
 0x24f   : > { %2509 = vmatpush3.xpose.msk.msra.mxu1 %vm546_vm0, %v3218_v37 }
 0x250   : > { %2510 = vmatprep.subr.mxu1 %v2740_v52 }
 0x253   : > { %2511 = vmatpush3.xpose.msk.msra.mxu1 %vm546_vm0, %v3277_v2 }
 0x254   : > { %2512 = vmatprep.subr.mxu1 %v2740_v52 }
 0x257   : > { %2513 = vmatpush3.xpose.msk.msra.mxu1 %vm546_vm0, %v3215_v36 }
 0x258   : > { %2552 = vmatprep.subr.mxu1 %v2740_v52 }
 0x25a   : > { %2515 = vmatmul.mubr.msk.f32.vlgmr.msra.gmra.mxu1 %vm546_vm0, %v2363_v38 }
 0x25b   : > { %2554 = vmatprep.mubr.msk.f32.mxu1 %vm2743_vm1, %v2740_v52 }
 0x28b   : > { %v1657_v37 = vpop.permute.xlu1 %1656  ;;  %v1661_v39 = vpop.permute.xlu0 %1660 }
 0x28c   : > { %v1715_v54 = vsel %vm546_vm0, %v1511_v56, %v1657_v37 }
 0x28d   : > { %v1716_v36 = vsel %vm548_vm2, %v1715_v54, %v1661_v39 }
 0x28f   : > { %v1665_v57 = vpop.permute.xlu1 %1664 }
 0x290   : > { %v1717_v2 = vsel %vm550_vm3, %v1716_v36, %v1665_v57 }
 0x294   : > { %v1669_v60 = vpop.permute.xlu0 %1668  ;;  %v1673_v16 = vpop.permute.xlu1 %1672 }
 0x295   : > { %v1718_v19 = vsel %vm552_vm4, %v1717_v2, %v1669_v60 }
 0x296   : > { %v1719_v27 = vsel %vm554_vm5, %v1718_v19, %v1673_v16 }
 0x298   : > { %v1677_v58 = vpop.permute.xlu0 %1676  ;;  %v1681_v25 = vpop.permute.xlu1 %1680 }
 0x299   : > { %v1720_v26 = vsel %vm556_vm6, %v1719_v27, %v1677_v58 }
 0x29a   : > { %v1721_v61 = vsel %vm558_vm7, %v1720_v26, %v1681_v25 }
 0x29c   : > { %v1689_v62 = vpop.permute.xlu1 %1688  ;;  %v1685_v49 = vpop.permute.xlu0 %1684 }
 0x29d   : > { %v1722_v32 = vsel %vm560_vm8, %v1721_v61, %v1685_v49 }
 0x29e   : > { %v1723_v1 = vsel %vm562_vm9, %v1722_v32, %v1689_v62 }
 0x2a0   : > { %v1697_v0 = vpop.permute.xlu1 %1696  ;;  %v1693_v45 = vpop.permute.xlu0 %1692 }
 0x2a1   : > { %v1724_v10 = vsel %vm564_vm10, %v1723_v1, %v1693_v45 }
 0x2a2   : > { %v1725_v56 = vsel %vm566_vm11, %v1724_v10, %v1697_v0 }
 0x2a4   : > { %v1705_v55 = vpop.permute.xlu1 %1704  ;;  %v1701_v59 = vpop.permute.xlu0 %1700 }
 0x2a5   : > { %v1726_v53 = vsel %vm568_vm12, %v1725_v56, %v1701_v59 }
 0x2a6   : > { %v1727_v13 = vsel %vm570_vm13, %v1726_v53, %v1705_v55 }
 0x2a8   : > { %v1713_v23 = vpop.permute.xlu1 %1712  ;;  %v1709_v24 = vpop.permute.xlu0 %1708 }
 0x2a9   : > { %v1728_v30 = vsel %vm572_vm14, %v1727_v13, %v1709_v24 }
 0x2aa   : > { %v1729_v31 = vsel %vm574_vm15, %v1728_v30, %v1713_v23 }
 0x2ab   : > { %2553 = vmatpush3.msra.mxu1 %v1729_v31 }
 0x2ac   : > { %2555 = vmatmul.mubr.msk.f32.vlgmr.msra.gmra.mxu1 %vm548_vm2, %v3087_v4  ;;  %v2274_v4 = vld [vmem:[%s3638_s3] sm:$0xff] }
 0x2e1   : > { %v1379_v34 = vpop.f32.mrf.mxu0 }
 0x2e3   : > { %v2551_v35 = vpop.f32.mrf.mxu0 }
 0x31a   : > { %v1258_v42 = vpop.f32.mrf.mxu1 }
 0x31b   : > { %v3433_v29 = vadd.f32 %v1379_v34, %v1258_v42 }
 0x31c   : > { %v2516_v44 = vpop.f32.mrf.mxu1 }
 0x36c   : > { %v1796_v46 = vpop.f32.mrf.mxu1 }
 0x36d   : > { %v3436_v28 = vadd.f32 %v1796_v46, %v3111_v47  ;;  %v2764_v47 = vmov 0  }
 0x36e   : > { %v2556_v50 = vpop.f32.mrf.mxu1  ;;  %2666 = vset.pattern.permute.xlu1 %v2764_v47  ;;  %2667 = vset.pattern.permute.xlu0 %v2764_v47 }
 0x36f   : > { %1825 = vrot.lane.b32.xlu1 %v3436_v28, %s2758_s29  ;;  %1822 = vrot.lane.b32.xlu0 %v3436_v28, %s3659_s14  ;;  %s3662_s29 = smov 124   ;;  %s2296_s14 = sshll.u32 %s190_s13, 4  ;;  %s2297_s14 = int_to_ptr.vmem [resolvable:$true] %s2296_s14 }
 0x373   : > { %1831 = vrot.lane.b32.xlu1 %v3436_v28, %s2760_s27  ;;  %1828 = vrot.lane.b32.xlu0 %v3436_v28, %s3660_s20  ;;  %s3663_s27 = smov 112  }
 0x377   : > { %1837 = vrot.lane.b32.xlu1 %v3436_v28, %s2762_s5  ;;  %1834 = vrot.lane.b32.xlu0 %v3436_v28, %s2759_s23  ;;  %s3665_s5 = smov 104   ;;  %s3666_s23 = smov 108  }
 0x37b   : > { %1843 = vrot.lane.b32.xlu1 %v3436_v28, %s2763_s28  ;;  %1840 = vrot.lane.b32.xlu0 %v3436_v28, %s2761_s30  ;;  %s3667_s28 = smov 100  }
 0x37f   : > { %1804 = vrot.lane.b32.xlu1 %v3436_v28, %s3661_s22  ;;  %1801 = vrot.lane.b32.xlu0 %v3436_v28, %s3662_s29  ;;  %s2294_s29 = scalar_lea.hbm %s3639_s4, %s2418_s12 }
 0x383   : > { %1810 = vrot.lane.b32.xlu1 %v3436_v28, %s3663_s27  ;;  %1807 = vrot.lane.b32.xlu0 %v3436_v28, %s3664_s6  ;;  %s2283_s27 = scalar_lea.sflag [#allocation3], %s188_s10  ;;  %s2668_s6 = scalar_lea.vmem %s2297_s14, 128 }
 0x384   : > { %p2669_p11 = scmp.ne.s32.totalorder %s2297_s14, %s2668_s6 }
 0x386   : > { %p2670_p12 = pnand %p2669_p11, %p2829_p5 }
 0x387   : > { %1816 = vrot.lane.b32.xlu1 %v3436_v28, %s3665_s5  ;;  %1813 = vrot.lane.b32.xlu0 %v3436_v28, %s3666_s23  ;;  %s2765_s5 = smov [#allocation2]  }
 0x388   : > { %p2671_p13 = pneg %p2670_p12  ;;  %s2672_s19 = sshll.u32 %s2765_s5, 4  ;;  %s2673_s19 = int_to_ptr.vmem [resolvable:$false] %s2672_s19 }
 0x389   : > { %s2674_s23 = scalar_lea.vmem %s2673_s19, 256  ;;  %p2675_p0 = scmp.lt.s32.totalorder %s2297_s14, %s2673_s19 }
 0x38a   : > { %p2676_p1 = scmp.lt.s32.totalorder %s2674_s23, %s2668_s6 }
 0x38b   : > { %1819 = vrot.lane.b32.xlu0 %v3436_v28, %s3667_s28  ;;  %2277 = vperm.xlu1 %2666, %v2274_v4  }
 0x38c   : > { %p2677_p2 = por %p2676_p1, %p2675_p0 }
 0x38e   : > { %p2678_p3 = pnand %p2677_p2, %p2671_p13 }
 0x3e1   : > { %v3471_v63 = vpop.permute.xlu1 %1825  ;;  %v3473_v48 = vpop.permute.xlu0 %1822 }
 0x3e5   : > { %v3475_v51 = vpop.permute.xlu1 %1831  ;;  %v3477_v43 = vpop.permute.xlu0 %1828 }
 0x3e6   : > { %v1999_v38 = vcombine.high %v3471_v63, %v3475_v51  ;;  %v1983_v37 = vcombine.high %v3473_v48, %v3477_v43 }
 0x3e8   : > { %v2013_v54 = vrot.slane %v1999_v38, %v2846_v8  ;;  %v1997_v36 = vrot.slane %v1983_v37, %v2846_v8 }
 0x3e9   : > { %v3483_v39 = vpop.permute.xlu1 %1837  ;;  %v3485_v57 = vpop.permute.xlu0 %1834 }
 0x3ea   : > { %v2063_v25 = vcombine.high %v1997_v36, %v2013_v54  ;;  %v2062_v37 = vcombine.low %v1997_v36, %v2013_v54 }
 0x3ec   : > { %v2077_v32 = vrot.slane %v2063_v25, %v2878_v20 }
 0x3ed   : > { %v1844_v2 = vpop.permute.xlu1 %1843  ;;  %v1841_v60 = vpop.permute.xlu0 %1840 }
 0x3ee   : > { %v2031_v16 = vcombine.high %v3483_v39, %v1844_v2  ;;  %v2015_v19 = vcombine.high %v3485_v57, %v1841_v60 }
 0x3f0   : > { %v2045_v27 = vrot.slane %v2031_v16, %v2846_v8  ;;  %v2029_v58 = vrot.slane %v2015_v19, %v2846_v8 }
 0x3f1   : > { %v3493_v26 = vpop.permute.xlu1 %1804  ;;  %v3495_v61 = vpop.permute.xlu0 %1801 }
 0x3f2   : > { %v2095_v62 = vcombine.high %v2029_v58, %v2045_v27  ;;  %v1847_v53 = vcombine.high %v3436_v28, %v3493_v26  ;;  %v2094_v4 = vcombine.low %v2029_v58, %v2045_v27  ;;  %v2014_v27 = vcombine.low %v3485_v57, %v1841_v60 }
 0x3f4   : > { %v2109_v49 = vrot.slane %v2095_v62, %v2878_v20  ;;  %v1861_v34 = vrot.slane %v1847_v53, %v2846_v8  ;;  %v2102_v19 = vrot.slane %v2094_v4, %v2878_v20  ;;  %v2022_v57 = vrot.slane %v2014_v27, %v2846_v8 }
 0x3f5   : > { %v3499_v0 = vpop.permute.xlu1 %1810  ;;  %v3501_v1 = vpop.permute.xlu0 %1807 }
 0x3f6   : > { %v2117_v45 = vcombine.high %v2077_v32, %v2109_v49  ;;  %v1863_v10 = vcombine.high %v3495_v61, %v3501_v1  ;;  %v2116_v38 = vcombine.low %v2077_v32, %v2109_v49  ;;  %v1982_v32 = vcombine.low %v3473_v48, %v3477_v43 }
 0x3f7   : > { %v1862_v48 = vcombine.low %v3495_v61, %v3501_v1 }
 0x3f8   : > { %v2133_v59 = vmul.f32 0.95, %v2117_v45  ;;  %v1877_v24 = vrot.slane %v1863_v10, %v2846_v8  ;;  %v2131_v25 = vmul.f32 0.95, %v2116_v38 }
 0x3f9   : > { %v3505_v55 = vpop.permute.xlu1 %1816  ;;  %v1814_v56 = vpop.permute.xlu0 %1813  ;;  %v1870_v61 = vrot.slane %v1862_v48, %v2846_v8 }
 0x3fa   : > { %v1879_v23 = vcombine.high %v3499_v0, %v3505_v55  ;;  %v2149_v13 = vadd.f32 %v2133_v59, %v3199_v40  ;;  %v1927_v44 = vcombine.high %v1861_v34, %v1877_v24  ;;  %v2070_v59 = vrot.slane %v2062_v37, %v2878_v20 }
 0x3fb   : > { %v1926_v53 = vcombine.low %v1861_v34, %v1877_v24  ;;  %v2147_v49 = vadd.f32 %v2131_v25, %v3202_v41  ;;  %v1878_v43 = vcombine.low %v3499_v0, %v3505_v55  ;;  %v1846_v34 = vcombine.low %v3436_v28, %v3493_v26 }
 0x3fc   : > { %2558 = vmatpush3.xpose.msk.msra.mxu0 %vm546_vm0, %v2149_v13  ;;  %v1893_v35 = vrot.slane %v1879_v23, %v2846_v8  ;;  %v1941_v40 = vrot.slane %v1927_v44, %v2878_v20  ;;  %v2030_v23 = vcombine.low %v3483_v39, %v1844_v2  ;;  %v2115_v54 = vcombine.high %v2070_v59, %v2102_v19 }
 0x3fd   : > { %v1820_v30 = vpop.permute.xlu0 %1819  ;;  %2559 = vmatprep.subr.mxu0 %v2740_v52  ;;  %v1934_v13 = vrot.slane %v1926_v53, %v2878_v20  ;;  %v1886_v1 = vrot.slane %v1878_v43, %v2846_v8  ;;  %v1854_v55 = vrot.slane %v1846_v34, %v2846_v8 }
 0x3fe   : > { %v1895_v31 = vcombine.high %v1814_v56, %v1820_v30  ;;  %v2038_v39 = vrot.slane %v2030_v23, %v2846_v8  ;;  %v2129_v2 = vmul.f32 0.95, %v2115_v54  ;;  %v1894_v60 = vcombine.low %v1814_v56, %v1820_v30 }
 0x3ff   : > { %v2114_v56 = vcombine.low %v2070_v59, %v2102_v19  ;;  %v1910_v54 = vcombine.low %v1854_v55, %v1870_v61 }
 0x400   : > { %v1909_v42 = vrot.slane %v1895_v31, %v2846_v8  ;;  %v2079_v31 = vcombine.high %v2022_v57, %v2038_v39  ;;  %v2078_v19 = vcombine.low %v2022_v57, %v2038_v39 }
 0x401   : > { %v2127_v28 = vmul.f32 0.95, %v2114_v56 }
 0x402   : > { %v1959_v46 = vcombine.high %v1893_v35, %v1909_v42  ;;  %v1958_v62 = vcombine.low %v1893_v35, %v1909_v42  ;;  %v2145_v35 = vadd.f32 %v2129_v2, %v3192_v33  ;;  %v2093_v0 = vrot.slane %v2079_v31, %v2878_v20 }
 0x404   : > { %v1973_v50 = vrot.slane %v1959_v46, %v2878_v20  ;;  %v1966_v36 = vrot.slane %v1958_v62, %v2878_v20 }
 0x406   : > { %v1981_v47 = vcombine.high %v1941_v40, %v1973_v50  ;;  %v1980_v45 = vcombine.low %v1941_v40, %v1973_v50  ;;  %v1979_v24 = vcombine.high %v1934_v13, %v1966_v36  ;;  %v1978_v44 = vcombine.low %v1934_v13, %v1966_v36 }
 0x407   : > { %v1911_v50 = vcombine.high %v1854_v55, %v1870_v61 }
 0x408   : > { %v2132_v16 = vmul.f32 0.95, %v1981_v47  ;;  %v2130_v58 = vmul.f32 0.95, %v1980_v45  ;;  %v2128_v30 = vmul.f32 0.95, %v1979_v24 }
 0x409   : > { %v2126_v47 = vmul.f32 0.95, %v1978_v44  ;;  %v1925_v38 = vrot.slane %v1911_v50, %v2878_v20 }
 0x40a   : > { %v2148_v10 = vadd.f32 %v2132_v16, %v3171_v11  ;;  %v1998_v11 = vcombine.low %v3471_v63, %v3475_v51  ;;  %v2146_v41 = vadd.f32 %v2130_v58, %v3168_v9  ;;  %v1990_v51 = vrot.slane %v1982_v32, %v2846_v8 }
 0x40b   : > { %v1902_v9 = vrot.slane %v1894_v60, %v2846_v8  ;;  %v2144_v46 = vadd.f32 %v2128_v30, %v3165_v21  ;;  %v2142_v16 = vadd.f32 %v2126_v47, %v3160_v15 }
 0x40c   : > { %2560 = vmatpush3.xpose.msk.msra.mxu0 %vm546_vm0, %v2148_v10  ;;  %v2006_v63 = vrot.slane %v1998_v11, %v2846_v8  ;;  %v2143_v8 = vadd.f32 %v2127_v28, %v3188_v22  ;;  %v2086_v10 = vrot.slane %v2078_v19, %v2878_v20  ;;  %v1918_v11 = vrot.slane %v1910_v54, %v2878_v20 }
 0x40d   : > { %2561 = vmatprep.subr.mxu0 %v2740_v52  ;;  %v1943_v26 = vcombine.high %v1886_v1, %v1902_v9  ;;  %v1942_v53 = vcombine.low %v1886_v1, %v1902_v9 }
 0x40e   : > { %v2047_v42 = vcombine.high %v1990_v51, %v2006_v63  ;;  %v2046_v22 = vcombine.low %v1990_v51, %v2006_v63  ;;  %v2278_v63 = vpop.permute.xlu1 %2277 }
 0x40f   : > { %v1957_v4 = vrot.slane %v1943_v26, %v2878_v20  ;;  %v1950_v36 = vrot.slane %v1942_v53, %v2878_v20 }
 0x410   : > { %2562 = vmatpush3.xpose.msk.msra.mxu0 %vm546_vm0, %v2147_v49  ;;  %v2061_v33 = vrot.slane %v2047_v42, %v2878_v20  ;;  %v2054_v27 = vrot.slane %v2046_v22, %v2878_v20 }
 0x411   : > { %2563 = vmatprep.subr.mxu0 %v2740_v52  ;;  %v1977_v37 = vcombine.high %v1925_v38, %v1957_v4  ;;  %v1976_v23 = vcombine.low %v1925_v38, %v1957_v4  ;;  %v1975_v32 = vcombine.high %v1918_v11, %v1950_v36 }
 0x412   : > { %v2113_v40 = vcombine.high %v2061_v33, %v2093_v0  ;;  %v2112_v25 = vcombine.low %v2061_v33, %v2093_v0  ;;  %v2110_v39 = vcombine.low %v2054_v27, %v2086_v10 }
 0x413   : > { %v2124_v62 = vmul.f32 0.95, %v1977_v37  ;;  %v2122_v58 = vmul.f32 0.95, %v1976_v23  ;;  %v2120_v57 = vmul.f32 0.95, %v1975_v32 }
 0x414   : > { %2564 = vmatpush3.xpose.msk.msra.mxu0 %vm546_vm0, %v2146_v41  ;;  %v2125_v21 = vmul.f32 0.95, %v2113_v40  ;;  %v2123_v59 = vmul.f32 0.95, %v2112_v25  ;;  %v2119_v20 = vmul.f32 0.95, %v2110_v39 }
 0x415   : > { %2565 = vmatprep.subr.mxu0 %v2740_v52  ;;  %v2140_v15 = vadd.f32 %v2124_v62, %v3157_v7  ;;  %v2138_v13 = vadd.f32 %v2122_v58, %v3154_v6  ;;  %v2136_v60 = vadd.f32 %v2120_v57, %v3151_v5  ;;  %v2399_v41 = vld [vmem:[%s3637_s2 + $0x10] sm:$0xff] }
 0x416   : > { %v2141_v45 = vadd.f32 %v2125_v21, %v3185_v18  ;;  %v2111_v18 = vcombine.high %v2054_v27, %v2086_v10  ;;  %v2139_v49 = vadd.f32 %v2123_v59, %v3182_v17  ;;  %v1974_v17 = vcombine.low %v1918_v11, %v1950_v36 }
 0x417   : > { %v2135_v24 = vadd.f32 %v2119_v20, %v3174_v12 }
 0x418   : > { %2566 = vmatpush3.xpose.msk.msra.mxu0 %vm546_vm0, %v2145_v35  ;;  %v2121_v7 = vmul.f32 0.95, %v2111_v18  ;;  %v2118_v6 = vmul.f32 0.95, %v1974_v17 }
 0x419   : > { %2567 = vmatprep.subr.mxu0 %v2740_v52 }
 0x41a   : > { %v2137_v2 = vadd.f32 %v2121_v7, %v3179_v14  ;;  %v2134_v14 = vadd.f32 %v2118_v6, %v3148_v3 }
 0x41c   : > { %2568 = vmatpush3.xpose.msk.msra.mxu0 %vm546_vm0, %v2144_v46 }
 0x41d   : > { %2569 = vmatprep.subr.mxu0 %v2740_v52 }
 0x420   : > { %2570 = vmatpush3.xpose.msk.msra.mxu0 %vm546_vm0, %v2143_v8 }
 0x421   : > { %2571 = vmatprep.subr.mxu0 %v2740_v52 }
 0x424   : > { %2572 = vmatpush3.xpose.msk.msra.mxu0 %vm546_vm0, %v2142_v16 }
 0x425   : > { %2573 = vmatprep.subr.mxu0 %v2740_v52 }
 0x428   : > { %2574 = vmatpush3.xpose.msk.msra.mxu0 %vm546_vm0, %v2141_v45 }
 0x429   : > { %2575 = vmatprep.subr.mxu0 %v2740_v52 }
 0x42c   : > { %2576 = vmatpush3.xpose.msk.msra.mxu0 %vm546_vm0, %v2140_v15 }
 0x42d   : > { %2577 = vmatprep.subr.mxu0 %v2740_v52 }
 0x430   : > { %2578 = vmatpush3.xpose.msk.msra.mxu0 %vm546_vm0, %v2139_v49 }
 0x431   : > { %2579 = vmatprep.subr.mxu0 %v2740_v52 }
 0x434   : > { %2580 = vmatpush3.xpose.msk.msra.mxu0 %vm546_vm0, %v2138_v13 }
 0x435   : > { %2581 = vmatprep.subr.mxu0 %v2740_v52 }
 0x438   : > { %2582 = vmatpush3.xpose.msk.msra.mxu0 %vm546_vm0, %v2137_v2 }
 0x439   : > { %2583 = vmatprep.subr.mxu0 %v2740_v52 }
 0x43c   : > { %2584 = vmatpush3.xpose.msk.msra.mxu0 %vm546_vm0, %v2136_v60 }
 0x43d   : > { %2585 = vmatprep.subr.mxu0 %v2740_v52 }
 0x440   : > { %2586 = vmatpush3.xpose.msk.msra.mxu0 %vm546_vm0, %v2135_v24 }
 0x441   : > { %2587 = vmatprep.subr.mxu0 %v2740_v52 }
 0x444   : > { %2588 = vmatpush3.xpose.msk.msra.mxu0 %vm546_vm0, %v2134_v14 }
 0x447   : > { %2590 = vmatmul.mubr.msk.f32.vlgmr.msra.gmra.mxu0 %vm546_vm0, %v2399_v41 }
 0x507   : > { %v2269_v5 = vpop.f32.mrf.mxu0 }
 0x508   : > { %v2273_v52 = vadd.f32 %v2269_v5, %v3433_v29 }
 0x509   : > { %v2591_v12 = vpop.f32.mrf.mxu0 }
 0x50a   : > { %v2280_v3 = vadd.f32 %v2278_v63, %v2273_v52 }
 0x50c   : > { %2281 = vst [vmem:[%s190_s13] sm:$0xff] %v2280_v3 }
 0x50d   : > { %2681 = shalt.err (!%p2678_p3)
}
 0x50e   : > { %s2682_s28 = scalar_lea.hbm %s2294_s29, 128  ;;  %s2686_s8 = scalar_lea.hbm %s3639_s4, 256 }
 0x50f   : > { %p2683_p4 = scmp.ne.s32.totalorder %s2294_s29, %s2682_s28  ;;  %p2687_p9 = scmp.lt.s32.totalorder %s2294_s29, %s3639_s4 }
 0x510   : > { %p2688_p10 = scmp.lt.s32.totalorder %s2686_s8, %s2682_s28 }
 0x511   : > { %p2684_p7 = pnand %p2683_p4, %p2829_p5 }
 0x512   : > { %p2689_p11 = por %p2688_p10, %p2687_p9 }
 0x513   : > { %p2685_p8 = pneg %p2684_p7 }
 0x515   : > { %p2690_p12 = pnand %p2689_p11, %p2685_p8 }
 0x517   : > { %2693 = shalt.err (!%p2690_p12)
}
 0x518   : > { %2592 = dma.vmem_to_hbm [thread:$0]  (%p2829_p5), %s2297_s14, 128, %s2294_s29, %s2283_s27  }
 0x519 PF: > { %p2598_p13 = scmp.ge.s32.totalorder %s2728_s18, 2  ;;  %s2308_s11 = sand.u32 1, %s2716_s15  }
 0x51a   : > { %s2309_s12 = scalar_lea.sflag [#allocation3], %s2308_s11 }
 0x51b   : > { %p2595_p0 = pnand %p2598_p13, %p2833_p6 }
 0x51d   : > { %p2596_p1 = pneg %p2595_p0 }
 0x51f   : > { %2711 = dma.done.wait (%p2596_p1), %s2309_s12, 128  }
 0x520   : > { %2713 = vsyncadd (%p2596_p1), %s2309_s12, 4294967168  ;;  %p14_p2 = scmp.ge.s32.totalorder %s2816_s21, 4   ;;  %s3668_s15 = smov %s2720_s16 }
 0x521   : > { %s3669_s16 = smov %s2724_s17  ;;  %s3670_s17 = smov %s2827_s24 }
 0x522   : > { %s3671_s18 = smov %s2816_s21  ;;  %16 = sbr.rel (!%p14_p2) target bundleno = 3 (0x3), region = 73 }
 0x527   :  { %2314 = vsyncpa [#allocation3], 1 }
 0x528   :  { %2316 = vsyncpa [#allocation3 + $0x1], 1 }

</bundles_post_ra>
